<compile_context>
chip_gen: v5e
topology: v5e:2x2
jax: 0.10.0
libtpu: 0.0.40
codegen_flags: <defaults>
</compile_context>

<pallas_src>
import jax
import jax.numpy as jnp
from jax.experimental import pallas as pl
from jax.experimental.pallas import tpu as pltpu


def _left_pad_kernel(x_ref, o_ref):
    # x_ref: (row_tile, L) block, o_ref: (row_tile, P + L) block.
    pad = o_ref.shape[-1] - x_ref.shape[-1]  # static at trace time
    if pad > 0:
        # Zero head. Lane-dense unmasked store when pad % 128 == 0; masked
        # partial store otherwise (correct either way).
        o_ref[:, :pad] = jnp.zeros((o_ref.shape[0], pad), dtype=o_ref.dtype)
    # Data body at static element offset `pad`.
    o_ref[:, pad:] = x_ref[...]


def _round_up(x: int, m: int) -> int:
    return ((x + m - 1) // m) * m


# Double-buffered (input + output) block budget.  24 MiB is safe on every
# generation (v5e/v6e: 128 MiB physical VMEM; v7x: 64 MiB physical shared
# headroom across two TensorCores) while giving ~roofline-sized tiles.
_TILE_BUDGET_BYTES = 24 << 20
# Never request a scoped VMEM limit above this (keeps margin under v7x's
# 64 MiB physical VMEM).
_VMEM_LIMIT_CAP_BYTES = 48 << 20


def _pick_row_tile(rows: int, in_len: int, out_len: int, dtype_bytes: int,
                   budget_bytes: int) -> int:
    """Largest pack-aligned row tile whose double-buffered in+out blocks fit
    the budget; keeps >= 2 grid steps when the row count allows it."""
    # Sublane pack factor: 8 rows per f32 vreg, 16 for bf16, 32 for int8/fp8.
    pack = 8 * max(1, 4 // max(1, dtype_bytes))
    per_row_bytes = 2 * (in_len + out_len) * dtype_bytes  # 2x = double-buffered
    budget_rows = max(1, budget_bytes // per_row_bytes)
    row_tile = max(pack, (budget_rows // pack) * pack)
    # No point exceeding the (pack-rounded) total row count.
    row_tile = min(row_tile, _round_up(rows, pack))
    # If everything fits in one block, still split into >= 2 grid steps so the
    # in/out DMAs pipeline and v7x can shard the parallel row axis across both
    # TensorCores.
    if rows > pack and row_tile >= rows:
        row_tile = max(pack, _round_up(pl.cdiv(rows, 2), pack))
    return row_tile


def left_padding_1d(x: jax.Array, padding_size: int, *,
                    force_pallas: bool = False) -> jax.Array:
    """Equivalent of LeftPadding1D(padding_size).forward(x), x of shape (B, C, L)."""
    if x.ndim != 3:
        raise ValueError(f"expected (B, C, L), got shape {x.shape}")
    B, C, L = x.shape

    if padding_size == 0 and not force_pallas:
        return x  # nothing to do

    out_len = padding_size + L
    rows = B * C
    dtype_bytes = jnp.dtype(x.dtype).itemsize
    out_bytes = rows * out_len * dtype_bytes

    # Tiny problems: kernel dispatch + ~0.35 us per grid step dwarfs the copy;
    # let XLA fuse a pad into the surrounding graph instead.
    if not force_pallas and out_bytes < (1 << 20):
        return jnp.pad(x, [(0, 0), (0, 0), (padding_size, 0)])

    # Flatten (B, C) into one dense sublane axis; length stays on the lane axis.
    x2 = x.reshape(rows, L)

    row_tile = _pick_row_tile(rows, L, out_len, dtype_bytes, _TILE_BUDGET_BYTES)
    grid = (pl.cdiv(rows, row_tile),)

    # Explicit scoped-VMEM request: cover the double-buffered blocks with
    # headroom, capped under v7x's physical VMEM.
    block_bytes = 2 * row_tile * (L + out_len) * dtype_bytes
    vmem_limit = min(_VMEM_LIMIT_CAP_BYTES, max(block_bytes + (4 << 20), 16 << 20))

    out2 = pl.pallas_call(
        _left_pad_kernel,
        out_shape=jax.ShapeDtypeStruct((rows, out_len), x.dtype),
        grid=grid,
        in_specs=[pl.BlockSpec((row_tile, L), lambda r: (r, 0))],
        out_specs=pl.BlockSpec((row_tile, out_len), lambda r: (r, 0)),
        compiler_params=pltpu.CompilerParams(
            dimension_semantics=("parallel",),
            vmem_limit_bytes=vmem_limit,
        ),
        cost_estimate=pl.CostEstimate(
            flops=0,
            transcendentals=0,
            bytes_accessed=rows * (L + out_len) * dtype_bytes,
        ),
    )(x2)

    return out2.reshape(B, C, out_len)


def _reference(x: jax.Array, padding_size: int) -> jax.Array:
    B, C, _ = x.shape
    return jnp.concatenate(
        [jnp.zeros((B, C, padding_size), dtype=x.dtype), x], axis=2)


if __name__ == "__main__":
    key = jax.random.PRNGKey(0)

    # Primary case (matches the module's typical tiny usage).
    B, C, L = 2, 4, 16
    padding_size = 8
    x = jax.random.normal(key, (B, C, L), dtype=jnp.float32)
    y = jax.block_until_ready(left_padding_1d(x, padding_size, force_pallas=True))
    y_ref = _reference(x, padding_size)
    assert y.shape == (B, C, padding_size + L), y.shape
    assert y.dtype == x.dtype
    assert jnp.array_equal(y, y_ref), "mismatch vs reference (case 1)"

    # Non-divisible row count (exercises the cdiv grid / partial last block)
    # with a lane-unaligned pad.
    k2 = jax.random.fold_in(key, 1)
    x2 = jax.random.normal(k2, (3, 5, 24), dtype=jnp.float32)
    y2 = jax.block_until_ready(left_padding_1d(x2, 5, force_pallas=True))
    assert jnp.array_equal(y2, _reference(x2, 5)), "mismatch vs reference (case 2)"

    # Packed dtype (bf16 -> 16-row sublane pack factor).
    k3 = jax.random.fold_in(key, 2)
    x3 = jax.random.normal(k3, (3, 5, 32), dtype=jnp.bfloat16)
    y3 = jax.block_until_ready(left_padding_1d(x3, 7, force_pallas=True))
    assert jnp.array_equal(y3, _reference(x3, 7)), "mismatch vs reference (case 3)"

    print("KERNEL_OK")
</pallas_src>

<mosaic_0001>
module attributes {stable_mosaic.version = 11 : i64} {
  func.func @_left_pad_kernel(%arg0: i32, %arg1: memref<8x16xf32, #tpu.memory_space<vmem>>, %arg2: memref<8x24xf32, #tpu.memory_space<vmem>>) attributes {dimension_semantics = [#tpu.dimension_semantics<parallel>], iteration_bounds = array<i64: 1>, scalar_prefetch = 0 : i64, scratch_operands = 0 : i64, tpu.core_type = #tpu.core_type<tc>, window_params = [{transform_indices = @transform_0, window_bounds = array<i64: 8, 16>}, {transform_indices = @transform_1, window_bounds = array<i64: 8, 24>}]} {
    %cst = arith.constant 0.000000e+00 : f32
    %0 = vector.broadcast %cst : f32 to vector<8x8xf32>
    %c0 = arith.constant 0 : index
    %c0_0 = arith.constant 0 : index
    %1 = vector.load %arg2[%c0, %c0_0] : memref<8x24xf32, #tpu.memory_space<vmem>>, vector<8x8xf32>
    tpu.vector_store %arg2[%c0, %c0_0], %0 {strides = array<i32>} : memref<8x24xf32, #tpu.memory_space<vmem>>, vector<8x8xf32>,
    %c0_1 = arith.constant 0 : index
    %c0_2 = arith.constant 0 : index
    %2 = vector.load %arg1[%c0_1, %c0_2] : memref<8x16xf32, #tpu.memory_space<vmem>>, vector<8x16xf32>
    %c0_3 = arith.constant 0 : index
    %c8 = arith.constant 8 : index
    %3 = vector.load %arg2[%c0_3, %c8] : memref<8x24xf32, #tpu.memory_space<vmem>>, vector<8x16xf32>
    tpu.vector_store %arg2[%c0_3, %c8], %2 {strides = array<i32>} : memref<8x24xf32, #tpu.memory_space<vmem>>, vector<8x16xf32>,
    return
  }
  func.func @transform_0(%arg0: i32) -> (i32, i32) {
    %c0_i32 = arith.constant 0 : i32
    %c0_i32_0 = arith.constant 0 : i32
    return %arg0, %c0_i32 : i32, i32
  }
  func.func @transform_1(%arg0: i32) -> (i32, i32) {
    %c0_i32 = arith.constant 0 : i32
    %c0_i32_0 = arith.constant 0 : i32
    return %arg0, %c0_i32 : i32, i32
  }
}

</mosaic_0001>

<bundles_post_ra>
// kernel: tpu_custom_call.1
= control target key start
LH: loop header
LB: loop body
LE: loop exit
PB: predicated region body
PF: predicated region fallthrough
CT: control target
= control target key end

     0   :  { %6 = vsyncpa [#allocation3], 0  ;;  %s125_s0 = inlined_call_operand.hbm [shape: f32[8,16], index: 0, kind: input, shape index: {}]   ;;  %s126_s1 = inlined_call_operand.hbm [shape: f32[8,24], index: 1, kind: output, shape index: {}]  }
   0x1   :  { %7 = vsyncpa [#allocation4], 0  ;;  %s13_s8 = sshll.u32 %s125_s0, 4  ;;  %s105_s9 = smov [#allocation2]   ;;  %s14_s8 = int_to_ptr.hbm [resolvable:$true] %s13_s8 }
   0x2   :  { %s15_s10 = sshll.u32 %s105_s9, 4  ;;  %s16_s10 = int_to_ptr.vmem [resolvable:$true] %s15_s10 }
   0x3   :  { %18 = dma.hbm_to_vmem [thread:$0]  %s14_s8, 128, %s16_s10, [#allocation3]  }
   0x4   :  { %101 = dma.done.wait [#allocation3], 128  }
   0x5   :  { %102 = vsyncadd [#allocation3], 4294967168  ;;  %vm23_vm0 = vcmask 64512   ;;  %v106_v0 = vmov 0.0   ;;  %v25_v1 = vld [vmem:[#allocation2] sm:$0xff]  ;;  %s107_s11 = smov 8  }
   0x6   :  { %24 = vst.msk [vmem:[#allocation5] sm:$0xff] %vm23_vm0, %v106_v0  ;;  %27 = vrot.lane.b32.xlu0 %v25_v1, %s107_s11  ;;  %s108_s12 = smov [#allocation5]   ;;  %s39_s16 = sshll.u32 %s126_s1, 4  ;;  %vm30_vm1 = vcmask 195648   ;;  %s40_s16 = int_to_ptr.hbm [resolvable:$true] %s39_s16 }
   0x7   :  { %s37_s13 = sshll.u32 %s108_s12, 4  ;;  %s38_s13 = int_to_ptr.vmem [resolvable:$true] %s37_s13 }
  0x78   :  { %v28_v2 = vpop.permute.xlu0 %27 }
  0x79   :  { %31 = vst.msk [vmem:[#allocation5] sm:$0xff] %vm30_vm1, %v28_v2 }
  0x7a   :  { %42 = dma.vmem_to_hbm [thread:$0]  %s38_s13, 128, %s40_s16, [#allocation4]  }
  0x7b   :  { %103 = dma.done.wait [#allocation4], 128  }
  0x7c   :  { %104 = vsyncadd [#allocation4], 4294967168 }
  0x7d   :  { %47 = vsyncpa [#allocation3], 1 }
  0x7e   :  { %48 = vsyncpa [#allocation4], 1 }

</bundles_post_ra>
